<compile_context>
chip_gen: v7x
topology: tpu7x:2x2x1
jax: 0.10.0
libtpu: 0.0.40
codegen_flags: <defaults>
</compile_context>

<pallas_src>
import jax
import jax.numpy as jnp
from jax.experimental import pallas as pl
from jax.experimental.pallas import tpu as pltpu


def _round_up(x, m):
    return (x + m - 1) // m * m


# ----------------------------- Pallas kernels -----------------------------

def conv_bn_relu_kernel(p_ref, w_ref, scale_ref, shift_ref, o_ref):
    """One (TM, K) x (K, C) MXU matmul tile + folded-BN affine + ReLU.

    p_ref:     (TM, K) bf16  im2col patch tile (streamed over the grid)
    w_ref:     (K, C)  bf16  conv weights           (resident across grid)
    scale_ref: (1, C)  f32   gamma / sqrt(var+eps)  (resident)
    shift_ref: (1, C)  f32   beta - mean * scale    (resident)
    o_ref:     (TM, C) bf16
    """
    acc = jnp.dot(p_ref[...], w_ref[...], preferred_element_type=jnp.float32)
    y = acc * scale_ref[...] + shift_ref[...]
    o_ref[...] = jnp.maximum(y, 0.0).astype(o_ref.dtype)


def maxpool_kernel(ev_ref, ev1_ref, od_ref, od1_ref, o_ref):
    """3x3 / stride-2 max pool over a block of T pool-output rows.

    The -inf-padded conv output is pre-split by column parity in the wrapper so
    every access below is a dense (unstrided) slice on lane-dense (.., C) slabs.
      ev_ref : (1, 2T, Wp+1, C) even cols, conv rows [2*T*i, 2*T*(i+1))
      ev1_ref: (1, 1,  Wp+1, C) even cols, halo row 2*T*(i+1)
      od_ref : (1, 2T, Wp,   C) odd cols,  conv rows [2*T*i, 2*T*(i+1))
      od1_ref: (1, 1,  Wp,   C) odd cols,  halo row 2*T*(i+1)
      o_ref  : (1, T,  Wp,   C) pooled rows [T*i, T*(i+1))
    """
    _, T, Wp, C = o_ref.shape
    ev = jnp.concatenate([ev_ref[0], ev1_ref[0]], axis=0)   # (2T+1, Wp+1, C)
    od = jnp.concatenate([od_ref[0], od1_ref[0]], axis=0)   # (2T+1, Wp,   C)
    # max over the 3 columns of each stride-2 window: cols {2w, 2w+1, 2w+2}.
    wmax = jnp.maximum(jnp.maximum(ev[:, :Wp, :], od), ev[:, 1:Wp + 1, :])
    # max over the 3 rows of each stride-2 window: rows {2t, 2t+1, 2t+2}.
    top = wmax[:2 * T].reshape(T, 2, Wp, C)   # row pairs (0,1),(2,3),...
    bot = wmax[1:].reshape(T, 2, Wp, C)       # row pairs (1,2),(3,4),...
    out = jnp.maximum(jnp.maximum(top[:, 0], top[:, 1]), bot[:, 1])
    o_ref[0] = out.astype(o_ref.dtype)


# ------------------------------- Wrapper ----------------------------------

def basic_stem_forward(x_nchw, w_oihw, gamma, beta, run_mean, run_var, eps=1e-5):
    """Forward pass of BasicStem. Input/output are NCHW, like PyTorch."""
    x = jnp.transpose(x_nchw, (0, 2, 3, 1))                 # NCHW -> NHWC
    N, H, W, Cin = x.shape
    Cout, _, KH, KW = w_oihw.shape
    assert (KH, KW) == (7, 7)

    # conv geometry: kernel 7, stride 2, padding 3
    Ho = (H + 2 * 3 - 7) // 2 + 1
    Wo = (W + 2 * 3 - 7) // 2 + 1
    M = N * Ho * Wo
    K = KH * KW * Cin

    # --- im2col staged in bf16 (glue, plain JAX) ---
    xp = jnp.pad(x, ((0, 0), (3, 3), (3, 3), (0, 0))).astype(jnp.bfloat16)
    taps = [xp[:, kh:kh + 2 * Ho:2, kw:kw + 2 * Wo:2, :]
            for kh in range(KH) for kw in range(KW)]
    patches = jnp.concatenate(taps, axis=-1).reshape(M, K)  # (M, 147) bf16

    # M tiling: large blocks (pipelined, megacore-shardable); pad M so the grid
    # is exact and every store is unmasked along M.
    TM = min(1024, _round_up(M, 8))
    M_pad = _round_up(M, TM)
    if M_pad != M:
        patches = jnp.pad(patches, ((0, M_pad - M), (0, 0)))

    # Pad output channels to 128 so stores are lane-dense (full-width vst).
    C = _round_up(Cout, 128)
    w_mat = jnp.transpose(w_oihw, (2, 3, 1, 0)).reshape(K, Cout)
    w_mat = jnp.pad(w_mat, ((0, 0), (0, C - Cout))).astype(jnp.bfloat16)

    # Fold inference-mode BatchNorm into a per-channel affine (kept in f32).
    inv_std = jax.lax.rsqrt(run_var.astype(jnp.float32) + eps)
    scale = gamma.astype(jnp.float32) * inv_std
    shift = beta.astype(jnp.float32) - run_mean.astype(jnp.float32) * scale
    scale = jnp.pad(scale, (0, C - Cout)).reshape(1, C)
    shift = jnp.pad(shift, (0, C - Cout)).reshape(1, C)

    # --- Pallas kernel 1: tiled conv matmul + BN + ReLU (bf16 in, f32 acc) ---
    conv_out = pl.pallas_call(
        conv_bn_relu_kernel,
        out_shape=jax.ShapeDtypeStruct((M_pad, C), jnp.bfloat16),
        grid=(M_pad // TM,),
        in_specs=[
            pl.BlockSpec((TM, K), lambda i: (i, 0)),        # streamed M tiles
            pl.BlockSpec((K, C), lambda i: (0, 0)),         # weights resident
            pl.BlockSpec((1, C), lambda i: (0, 0)),         # scale resident
            pl.BlockSpec((1, C), lambda i: (0, 0)),         # shift resident
        ],
        out_specs=pl.BlockSpec((TM, C), lambda i: (i, 0)),
        compiler_params=pltpu.CompilerParams(
            dimension_semantics=("parallel",)),
    )(patches, w_mat, scale, shift)

    y = conv_out[:M].reshape(N, Ho, Wo, C)                  # NHWC bf16, C=128

    # --- maxpool 3x3, stride 2, padding 1 (pad with -inf, like PyTorch) ---
    Hp = (Ho - 1) // 2 + 1
    Wp = (Wo - 1) // 2 + 1
    T = min(16, Hp)                                         # pool rows / block
    nblk = pl.cdiv(Hp, T)
    Hyp = 2 * T * nblk + 1                                  # padded conv rows
    Wyp = 2 * Wp + 1                                        # padded conv cols
    yp = jnp.pad(y, ((0, 0), (1, Hyp - 1 - Ho), (1, Wyp - 1 - Wo), (0, 0)),
                 constant_values=-jnp.inf)
    # Column-parity split: pool col w needs cols {2w, 2w+1, 2w+2} ->
    # even[w], odd[w], even[w+1]; kernel then only needs dense shifted slices.
    yp_e = yp[:, :, 0::2, :]                                # (N, Hyp, Wp+1, C)
    yp_o = yp[:, :, 1::2, :]                                # (N, Hyp, Wp,   C)

    # --- Pallas kernel 2: row-blocked max pool (no (P,9,C) gather) ---
    pooled = pl.pallas_call(
        maxpool_kernel,
        out_shape=jax.ShapeDtypeStruct((N, Hp, Wp, C), jnp.float32),
        grid=(N, nblk),
        in_specs=[
            pl.BlockSpec((1, 2 * T, Wp + 1, C), lambda n, i: (n, i, 0, 0)),
            pl.BlockSpec((1, 1, Wp + 1, C),
                         lambda n, i: (n, 2 * T * (i + 1), 0, 0)),
            pl.BlockSpec((1, 2 * T, Wp, C), lambda n, i: (n, i, 0, 0)),
            pl.BlockSpec((1, 1, Wp, C),
                         lambda n, i: (n, 2 * T * (i + 1), 0, 0)),
        ],
        out_specs=pl.BlockSpec((1, T, Wp, C), lambda n, i: (n, i, 0, 0)),
        compiler_params=pltpu.CompilerParams(
            dimension_semantics=("parallel", "parallel")),
    )(yp_e, yp_e, yp_o, yp_o)

    out_nhwc = pooled[..., :Cout]                           # drop channel pad
    return jnp.transpose(out_nhwc, (0, 3, 1, 2))            # NHWC -> NCHW


# ------------------------------ Reference ----------------------------------

def basic_stem_reference(x_nchw, w_oihw, gamma, beta, run_mean, run_var, eps=1e-5):
    """Pure-JAX f32 reference for correctness checking."""
    y = jax.lax.conv_general_dilated(
        x_nchw.astype(jnp.float32), w_oihw.astype(jnp.float32),
        window_strides=(2, 2), padding=((3, 3), (3, 3)),
        dimension_numbers=("NCHW", "OIHW", "NCHW"))
    scale = (gamma * jax.lax.rsqrt(run_var + eps)).reshape(1, -1, 1, 1)
    shift = (beta - run_mean * gamma * jax.lax.rsqrt(run_var + eps)).reshape(1, -1, 1, 1)
    y = jnp.maximum(y * scale + shift, 0.0)
    y = jax.lax.reduce_window(
        y, -jnp.inf, jax.lax.max,
        window_dimensions=(1, 1, 3, 3), window_strides=(1, 1, 2, 2),
        padding=((0, 0), (0, 0), (1, 1), (1, 1)))
    return y


# -------------------------------- Main --------------------------------------

if __name__ == "__main__":
    key = jax.random.PRNGKey(0)
    k_x, k_w, k_g, k_b, k_m, k_v = jax.random.split(key, 6)

    N, Cin, H, W = 2, 3, 16, 16
    Cout, KH, KW = 64, 7, 7

    x = jax.random.normal(k_x, (N, Cin, H, W), dtype=jnp.float32)

    # c2_msra_fill: kaiming_normal, fan_out, relu -> std = sqrt(2 / (KH*KW*Cout))
    std = (2.0 / (KH * KW * Cout)) ** 0.5
    w = jax.random.normal(k_w, (Cout, Cin, KH, KW), dtype=jnp.float32) * std

    # BatchNorm params / running stats (inference-mode semantics), deterministic.
    gamma = 1.0 + 0.1 * jax.random.normal(k_g, (Cout,), dtype=jnp.float32)
    beta = 0.1 * jax.random.normal(k_b, (Cout,), dtype=jnp.float32)
    run_mean = 0.1 * jax.random.normal(k_m, (Cout,), dtype=jnp.float32)
    run_var = 1.0 + 0.1 * jax.nn.softplus(
        jax.random.normal(k_v, (Cout,), dtype=jnp.float32))

    fwd = jax.jit(basic_stem_forward)
    out = jax.block_until_ready(fwd(x, w, gamma, beta, run_mean, run_var))

    ref = basic_stem_reference(x, w, gamma, beta, run_mean, run_var)
    assert out.shape == (N, Cout, 4, 4), out.shape
    max_err = float(jnp.max(jnp.abs(out - ref)))
    # bf16 MXU inputs / bf16 intermediate (f32 accumulation) -> widened tolerance.
    assert jnp.allclose(out, ref, atol=3e-2, rtol=3e-2), max_err

    print("KERNEL_OK")
</pallas_src>

<mosaic_0001>
module attributes {stable_mosaic.version = 11 : i64} {
  func.func @conv_bn_relu_kernel(%arg0: i32, %arg1: memref<128x147xbf16, #tpu.memory_space<vmem>>, %arg2: memref<147x128xbf16, #tpu.memory_space<vmem>>, %arg3: memref<1x128xf32, #tpu.memory_space<vmem>>, %arg4: memref<1x128xf32, #tpu.memory_space<vmem>>, %arg5: memref<128x128xbf16, #tpu.memory_space<vmem>>) attributes {dimension_semantics = [#tpu.dimension_semantics<parallel>], iteration_bounds = array<i64: 1>, scalar_prefetch = 0 : i64, scratch_operands = 0 : i64, tpu.core_type = #tpu.core_type<tc>, window_params = [{transform_indices = @transform_0, window_bounds = array<i64: 128, 147>}, {pipeline_mode = #tpu.pipeline_mode<synchronous>, transform_indices = @transform_1, window_bounds = array<i64: 147, 128>}, {pipeline_mode = #tpu.pipeline_mode<synchronous>, transform_indices = @transform_2, window_bounds = array<i64: 1, 128>}, {pipeline_mode = #tpu.pipeline_mode<synchronous>, transform_indices = @transform_3, window_bounds = array<i64: 1, 128>}, {transform_indices = @transform_4, window_bounds = array<i64: 128, 128>}]} {
    %c0 = arith.constant 0 : index
    %c0_0 = arith.constant 0 : index
    %0 = vector.load %arg1[%c0, %c0_0] : memref<128x147xbf16, #tpu.memory_space<vmem>>, vector<128x147xbf16>
    %c0_1 = arith.constant 0 : index
    %c0_2 = arith.constant 0 : index
    %1 = vector.load %arg2[%c0_1, %c0_2] : memref<147x128xbf16, #tpu.memory_space<vmem>>, vector<147x128xbf16>
    %cst = arith.constant dense<0.000000e+00> : vector<128x128xf32>
    %2 = tpu.matmul %0, %1, %cst {dimension_numbers = #tpu.dot_dimension_numbers<[1], [0], [0], [1], [0, 0, 1, 1], [], []>} : vector<128x147xbf16>, vector<147x128xbf16>, vector<128x128xf32> -> vector<128x128xf32>
    %c0_3 = arith.constant 0 : index
    %c0_4 = arith.constant 0 : index
    %3 = vector.load %arg3[%c0_3, %c0_4] : memref<1x128xf32, #tpu.memory_space<vmem>>, vector<1x128xf32>
    %4 = vector.broadcast %3 : vector<1x128xf32> to vector<128x128xf32>
    %5 = arith.mulf %2, %4 : vector<128x128xf32>
    %c0_5 = arith.constant 0 : index
    %c0_6 = arith.constant 0 : index
    %6 = vector.load %arg4[%c0_5, %c0_6] : memref<1x128xf32, #tpu.memory_space<vmem>>, vector<1x128xf32>
    %7 = vector.broadcast %6 : vector<1x128xf32> to vector<128x128xf32>
    %8 = arith.addf %5, %7 : vector<128x128xf32>
    %cst_7 = arith.constant 0.000000e+00 : f32
    %9 = vector.broadcast %cst_7 : f32 to vector<128x128xf32>
    %10 = arith.maximumf %8, %9 : vector<128x128xf32>
    %11 = arith.truncf %10 : vector<128x128xf32> to vector<128x128xbf16>
    %c0_8 = arith.constant 0 : index
    %c0_9 = arith.constant 0 : index
    %12 = vector.load %arg5[%c0_8, %c0_9] : memref<128x128xbf16, #tpu.memory_space<vmem>>, vector<128x128xbf16>
    tpu.vector_store %arg5[%c0_8, %c0_9], %11 {strides = array<i32>} : memref<128x128xbf16, #tpu.memory_space<vmem>>, vector<128x128xbf16>,
    return
  }
  func.func @transform_0(%arg0: i32) -> (i32, i32) {
    %c0_i32 = arith.constant 0 : i32
    %c0_i32_0 = arith.constant 0 : i32
    return %arg0, %c0_i32 : i32, i32
  }
  func.func @transform_1(%arg0: i32) -> (i32, i32) {
    %c0_i32 = arith.constant 0 : i32
    %c0_i32_0 = arith.constant 0 : i32
    %c0_i32_1 = arith.constant 0 : i32
    return %c0_i32, %c0_i32_0 : i32, i32
  }
  func.func @transform_2(%arg0: i32) -> (i32, i32) {
    %c0_i32 = arith.constant 0 : i32
    %c0_i32_0 = arith.constant 0 : i32
    %c0_i32_1 = arith.constant 0 : i32
    return %c0_i32, %c0_i32_0 : i32, i32
  }
  func.func @transform_3(%arg0: i32) -> (i32, i32) {
    %c0_i32 = arith.constant 0 : i32
    %c0_i32_0 = arith.constant 0 : i32
    %c0_i32_1 = arith.constant 0 : i32
    return %c0_i32, %c0_i32_0 : i32, i32
  }
  func.func @transform_4(%arg0: i32) -> (i32, i32) {
    %c0_i32 = arith.constant 0 : i32
    %c0_i32_0 = arith.constant 0 : i32
    return %arg0, %c0_i32 : i32, i32
  }
}

module attributes {stable_mosaic.version = 11 : i64} {
  func.func @maxpool_kernel(%arg0: i32, %arg1: i32, %arg2: memref<1x8x5x128xbf16, #tpu.memory_space<vmem>>, %arg3: memref<1x1x5x128xbf16, #tpu.memory_space<vmem>>, %arg4: memref<1x8x4x128xbf16, #tpu.memory_space<vmem>>, %arg5: memref<1x1x4x128xbf16, #tpu.memory_space<vmem>>, %arg6: memref<1x4x4x128xf32, #tpu.memory_space<vmem>>) attributes {dimension_semantics = [#tpu.dimension_semantics<parallel>, #tpu.dimension_semantics<parallel>], iteration_bounds = array<i64: 2, 1>, scalar_prefetch = 0 : i64, scratch_operands = 0 : i64, tpu.core_type = #tpu.core_type<tc>, window_params = [{transform_indices = @transform_0, window_bounds = array<i64: 1, 8, 5, 128>}, {transform_indices = @transform_1, window_bounds = array<i64: 1, 1, 5, 128>}, {transform_indices = @transform_2, window_bounds = array<i64: 1, 8, 4, 128>}, {transform_indices = @transform_3, window_bounds = array<i64: 1, 1, 4, 128>}, {transform_indices = @transform_4, window_bounds = array<i64: 1, 4, 4, 128>}]} {
    %c0 = arith.constant 0 : index
    %c0_0 = arith.constant 0 : index
    %c0_1 = arith.constant 0 : index
    %c0_2 = arith.constant 0 : index
    %0 = vector.load %arg2[%c0, %c0_0, %c0_1, %c0_2] : memref<1x8x5x128xbf16, #tpu.memory_space<vmem>>, vector<1x8x5x128xbf16>
    %1 = vector.shape_cast %0 : vector<1x8x5x128xbf16> to vector<8x5x128xbf16>
    %c0_3 = arith.constant 0 : index
    %c0_4 = arith.constant 0 : index
    %c0_5 = arith.constant 0 : index
    %c0_6 = arith.constant 0 : index
    %2 = vector.load %arg3[%c0_3, %c0_4, %c0_5, %c0_6] : memref<1x1x5x128xbf16, #tpu.memory_space<vmem>>, vector<1x1x5x128xbf16>
    %3 = vector.shape_cast %2 : vector<1x1x5x128xbf16> to vector<1x5x128xbf16>
    %4 = tpu.concatenate %1, %3 in 0 : vector<8x5x128xbf16>, vector<1x5x128xbf16> -> vector<9x5x128xbf16>
    %c0_7 = arith.constant 0 : index
    %c0_8 = arith.constant 0 : index
    %c0_9 = arith.constant 0 : index
    %c0_10 = arith.constant 0 : index
    %5 = vector.load %arg4[%c0_7, %c0_8, %c0_9, %c0_10] : memref<1x8x4x128xbf16, #tpu.memory_space<vmem>>, vector<1x8x4x128xbf16>
    %6 = vector.shape_cast %5 : vector<1x8x4x128xbf16> to vector<8x4x128xbf16>
    %c0_11 = arith.constant 0 : index
    %c0_12 = arith.constant 0 : index
    %c0_13 = arith.constant 0 : index
    %c0_14 = arith.constant 0 : index
    %7 = vector.load %arg5[%c0_11, %c0_12, %c0_13, %c0_14] : memref<1x1x4x128xbf16, #tpu.memory_space<vmem>>, vector<1x1x4x128xbf16>
    %8 = vector.shape_cast %7 : vector<1x1x4x128xbf16> to vector<1x4x128xbf16>
    %9 = tpu.concatenate %6, %8 in 0 : vector<8x4x128xbf16>, vector<1x4x128xbf16> -> vector<9x4x128xbf16>
    %10 = vector.extract_strided_slice %4 {offsets = [0, 0, 0], sizes = [9, 4, 128], strides = [1, 1, 1]} : vector<9x5x128xbf16> to vector<9x4x128xbf16>
    %11 = arith.maximumf %10, %9 : vector<9x4x128xbf16>
    %12 = vector.extract_strided_slice %4 {offsets = [0, 1, 0], sizes = [9, 4, 128], strides = [1, 1, 1]} : vector<9x5x128xbf16> to vector<9x4x128xbf16>
    %13 = arith.maximumf %11, %12 : vector<9x4x128xbf16>
    %14 = vector.extract_strided_slice %13 {offsets = [0, 0, 0], sizes = [8, 4, 128], strides = [1, 1, 1]} : vector<9x4x128xbf16> to vector<8x4x128xbf16>
    %15 = vector.shape_cast %14 : vector<8x4x128xbf16> to vector<4x2x4x128xbf16>
    %16 = vector.extract_strided_slice %13 {offsets = [1, 0, 0], sizes = [8, 4, 128], strides = [1, 1, 1]} : vector<9x4x128xbf16> to vector<8x4x128xbf16>
    %17 = vector.shape_cast %16 : vector<8x4x128xbf16> to vector<4x2x4x128xbf16>
    %18 = vector.extract_strided_slice %15 {offsets = [0, 0, 0, 0], sizes = [4, 1, 4, 128], strides = [1, 1, 1, 1]} : vector<4x2x4x128xbf16> to vector<4x1x4x128xbf16>
    %19 = vector.shape_cast %18 : vector<4x1x4x128xbf16> to vector<4x4x128xbf16>
    %20 = vector.extract_strided_slice %15 {offsets = [0, 1, 0, 0], sizes = [4, 1, 4, 128], strides = [1, 1, 1, 1]} : vector<4x2x4x128xbf16> to vector<4x1x4x128xbf16>
    %21 = vector.shape_cast %20 : vector<4x1x4x128xbf16> to vector<4x4x128xbf16>
    %22 = arith.maximumf %19, %21 : vector<4x4x128xbf16>
    %23 = vector.extract_strided_slice %17 {offsets = [0, 1, 0, 0], sizes = [4, 1, 4, 128], strides = [1, 1, 1, 1]} : vector<4x2x4x128xbf16> to vector<4x1x4x128xbf16>
    %24 = vector.shape_cast %23 : vector<4x1x4x128xbf16> to vector<4x4x128xbf16>
    %25 = arith.maximumf %22, %24 : vector<4x4x128xbf16>
    %26 = arith.extf %25 : vector<4x4x128xbf16> to vector<4x4x128xf32>
    %c0_15 = arith.constant 0 : index
    %c0_16 = arith.constant 0 : index
    %c0_17 = arith.constant 0 : index
    %c0_18 = arith.constant 0 : index
    %27 = vector.load %arg6[%c0_15, %c0_16, %c0_17, %c0_18] : memref<1x4x4x128xf32, #tpu.memory_space<vmem>>, vector<1x4x4x128xf32>
    %28 = vector.shape_cast %27 : vector<1x4x4x128xf32> to vector<4x4x128xf32>
    %29 = vector.shape_cast %26 : vector<4x4x128xf32> to vector<1x4x4x128xf32>
    tpu.vector_store %arg6[%c0_15, %c0_16, %c0_17, %c0_18], %29 {strides = array<i32>} : memref<1x4x4x128xf32, #tpu.memory_space<vmem>>, vector<1x4x4x128xf32>,
    return
  }
  func.func @transform_0(%arg0: i32, %arg1: i32) -> (i32, i32, i32, i32) {
    %c0_i32 = arith.constant 0 : i32
    %c0_i32_0 = arith.constant 0 : i32
    %c0_i32_1 = arith.constant 0 : i32
    return %arg0, %arg1, %c0_i32, %c0_i32_0 : i32, i32, i32, i32
  }
  func.func @transform_1(%arg0: i32, %arg1: i32) -> (i32, i32, i32, i32) {
    %c1_i32 = arith.constant 1 : i32
    %0 = arith.addi %arg1, %c1_i32 : i32
    %c8_i32 = arith.constant 8 : i32
    %1 = arith.muli %c8_i32, %0 : i32
    %c0_i32 = arith.constant 0 : i32
    %c0_i32_0 = arith.constant 0 : i32
    %c0_i32_1 = arith.constant 0 : i32
    return %arg0, %1, %c0_i32, %c0_i32_0 : i32, i32, i32, i32
  }
  func.func @transform_2(%arg0: i32, %arg1: i32) -> (i32, i32, i32, i32) {
    %c0_i32 = arith.constant 0 : i32
    %c0_i32_0 = arith.constant 0 : i32
    %c0_i32_1 = arith.constant 0 : i32
    return %arg0, %arg1, %c0_i32, %c0_i32_0 : i32, i32, i32, i32
  }
  func.func @transform_3(%arg0: i32, %arg1: i32) -> (i32, i32, i32, i32) {
    %c1_i32 = arith.constant 1 : i32
    %0 = arith.addi %arg1, %c1_i32 : i32
    %c8_i32 = arith.constant 8 : i32
    %1 = arith.muli %c8_i32, %0 : i32
    %c0_i32 = arith.constant 0 : i32
    %c0_i32_0 = arith.constant 0 : i32
    %c0_i32_1 = arith.constant 0 : i32
    return %arg0, %1, %c0_i32, %c0_i32_0 : i32, i32, i32, i32
  }
  func.func @transform_4(%arg0: i32, %arg1: i32) -> (i32, i32, i32, i32) {
    %c0_i32 = arith.constant 0 : i32
    %c0_i32_0 = arith.constant 0 : i32
    %c0_i32_1 = arith.constant 0 : i32
    return %arg0, %arg1, %c0_i32, %c0_i32_0 : i32, i32, i32, i32
  }
}

</mosaic_0001>

<bundles_post_ra>
// kernel: basic_stem_forward.3
= control target key start
LH: loop header
LB: loop body
LE: loop exit
PB: predicated region body
PF: predicated region fallthrough
CT: control target
= control target key end

     0   :  { %s795_s15 = smov 0   ;;  %s797_s16 = smov 0   ;;  %s881_s0 = inlined_call_operand.vmem [shape: bf16[2,9,5,128], index: 0, kind: input, shape index: {}, may-alias: {0,1}]   ;;  %s882_s1 = inlined_call_operand.vmem [shape: bf16[2,9,5,128], index: 1, kind: input, shape index: {}, may-alias: {0,1}]   ;;  %s883_s2 = inlined_call_operand.vmem [shape: bf16[2,9,4,128], index: 2, kind: input, shape index: {}, may-alias: {2,3}]   ;;  %s884_s3 = inlined_call_operand.vmem [shape: bf16[2,9,4,128], index: 3, kind: input, shape index: {}, may-alias: {2,3}]   ;;  %s885_s4 = inlined_call_operand.vmem [shape: f32[2,4,4,128], index: 4, kind: output, shape index: {}]  }
   0x1   :  { %s799_s17 = smov 0  }
   0x2 LB: > { %s26_s18 = sadd.s32 1, %s764_s16  ;;  %p690_p0 = scmp.ge.s32.totalorder %s768_s17, 1  ;;  %s768_s17 = sphi %s799_s17, %s14_s17   ;;  %s764_s16 = sphi %s797_s16, %s887_s16   ;;  %s760_s15 = sphi %s795_s15, %s886_s15  }
   0x3   : > { %p28_p1 = scmp.ge.s32.totalorder %s26_s18, 2  ;;  %p262_p2 = scmp.lt.s32.totalorder %s768_s17, 3 }
   0x5   : > { %s889_s18 = smov (%p28_p1, %s26_s18), 0  ;;  %p263_p3 = pnand %p690_p0, %p262_p2 }
   0x6   : > { %p338_p4 = scmp.lt.s32.totalorder (!%p263_p3), %s760_s15, 1 }
   0x7   : > { %266 = sbr.rel (%p263_p3) target bundleno = 52 (0x34), region = 36 }
   0xe   : > { %s891_s15 = smov (!%p338_p4, %s760_s15), 1 }
   0xf   : > { %s717_s19 = smul.u32 36, %s891_s15  ;;  %s703_s9 = sshll.u32 %s891_s15, 4 }
  0x10   : > { %s719_s23 = smul.u32 18, %s891_s15  ;;  %s401_s12 = scalar_lea.vmem %s885_s4, %s703_s9 }
  0x11   : > { %s821_s22 = scalar_lea.vmem %s881_s0, %s717_s19  ;;  %s846_s27 = sadd.s32 32, %s717_s19 }
  0x12   : > { %v403_v0 = vld [vmem:[%s821_s22] sm:$0x7]  ;;  %s830_s26 = scalar_lea.vmem %s883_s2, %s719_s23  ;;  %v404_v1 = vld [vmem:[%s821_s22 + $0x4] sm:$0x7]  ;;  %v405_v2 = vld [vmem:[%s821_s22 + $0x8] sm:$0x7]  ;;  %s360_s30 = scalar_lea.vmem %s882_s1, %s846_s27 }
  0x13   : > { %v431_v3 = vshrl.u32 %v403_v0, 16  ;;  %v434_v4 = vshll.u32 %v403_v0, 16  ;;  %v406_v5 = vld [vmem:[%s821_s22 + $0xc] sm:$0x7]  ;;  %v412_v6 = vld [vmem:[%s830_s26] sm:$0x3] }
  0x14   : > { %v413_v7 = vld [vmem:[%s830_s26 + $0x2] sm:$0x3]  ;;  %v838_v8 = vld [vmem:[%s821_s22 + $0x10] sm:$0x7]  ;;  %v414_v10 = vld [vmem:[%s830_s26 + $0x4] sm:$0x3]  ;;  %v421_v11 = vmax.bf16 %v412_v6, %v403_v0 }
  0x15   : > { %v433_v9 = vrot.slane %v431_v3, 4  ;;  %v422_v12 = vmax.bf16 %v413_v7, %v404_v1  ;;  %v436_v13 = vrot.slane %v434_v4, 5  ;;  %v440_v14 = vshrl.u32 %v404_v1, 16  ;;  %v415_v15 = vld [vmem:[%s830_s26 + $0x6] sm:$0x3]  ;;  %s860_s5 = sadd.s32 16, %s719_s23 }
  0x16   : > { %v443_v16 = vshll.u32 %v404_v1, 16  ;;  %v449_v17 = vshrl.u32 %v405_v2, 16  ;;  %v452_v18 = vshll.u32 %v405_v2, 16  ;;  %v458_v19 = vshrl.u32 %v406_v5, 16  ;;  %v416_v20 = vld [vmem:[%s830_s26 + $0x8] sm:$0x3]  ;;  %s390_s8 = scalar_lea.vmem %s884_s3, %s860_s5 }
  0x17   : > { %v437_v21 = vor.u32 %v436_v13, %v433_v9  ;;  %v442_v22 = vrot.slane %v440_v14, 4  ;;  %v461_v23 = vshll.u32 %v406_v5, 16  ;;  %v467_v24 = vshrl.u32 %v838_v8, 16  ;;  %v417_v33 = vld [vmem:[%s830_s26 + $0xa] sm:$0x3] }
  0x18   : > { %v445_v25 = vrot.slane %v443_v16, 5  ;;  %v451_v26 = vrot.slane %v449_v17, 4  ;;  %v454_v27 = vrot.slane %v452_v18, 5  ;;  %v460_v28 = vrot.slane %v458_v19, 4  ;;  %v408_v38 = vld [vmem:[%s821_s22 + $0x14] sm:$0x7] }
  0x19   : > { %v438_v29 = vrot.slane %v437_v21, 4  ;;  %v463_v30 = vrot.slane %v461_v23, 5  ;;  %v469_v31 = vrot.slane %v467_v24, 4  ;;  %v470_v32 = vshll.u32 %v838_v8, 16  ;;  %v418_v39 = vld [vmem:[%s830_s26 + $0xc] sm:$0x3] }
  0x1a   : > { %v423_v34 = vmax.bf16 %v414_v10, %v405_v2  ;;  %v424_v35 = vmax.bf16 %v415_v15, %v406_v5  ;;  %v446_v36 = vor.u32 %v445_v25, %v442_v22  ;;  %v455_v37 = vor.u32 %v454_v27, %v451_v26  ;;  %v409_v43 = vld [vmem:[%s821_s22 + $0x18] sm:$0x7]  ;;  %v410_v51 = vld [vmem:[%s821_s22 + $0x1c] sm:$0x7]  ;;  %v411_v60 = vld [vmem:[%s360_s30] sm:$0x7] }
  0x1b   : > { %v425_v40 = vmax.bf16 %v416_v20, %v838_v8  ;;  %v464_v41 = vor.u32 %v463_v30, %v460_v28  ;;  %v472_v42 = vrot.slane %v470_v32, 5  ;;  %v426_v44 = vmax.bf16 %v417_v33, %v408_v38  ;;  %v419_v5 = vld [vmem:[%s830_s26 + $0xe] sm:$0x3]  ;;  %v420_v13 = vld [vmem:[%s390_s8] sm:$0x3] }
  0x1c   : > { %v447_v45 = vrot.slane %v446_v36, 4  ;;  %v456_v46 = vrot.slane %v455_v37, 4  ;;  %v520_v47 = vmax.bf16 %v438_v29, %v421_v11  ;;  %v427_v48 = vmax.bf16 %v418_v39, %v409_v43 }
  0x1d   : > { %v465_v49 = vrot.slane %v464_v41, 4  ;;  %v473_v50 = vor.u32 %v472_v42, %v469_v31  ;;  %v476_v52 = vshrl.u32 %v408_v38, 16  ;;  %v479_v53 = vshll.u32 %v408_v38, 16 }
  0x1e   : > { %v521_v54 = vmax.bf16 %v447_v45, %v422_v12  ;;  %v522_v55 = vmax.bf16 %v456_v46, %v423_v34  ;;  %v485_v56 = vshrl.u32 %v409_v43, 16  ;;  %v488_v57 = vshll.u32 %v409_v43, 16 }
  0x1f   : > { %v474_v58 = vrot.slane %v473_v50, 4  ;;  %v523_v59 = vmax.bf16 %v465_v49, %v424_v35  ;;  %v478_v61 = vrot.slane %v476_v52, 4  ;;  %v481_v62 = vrot.slane %v479_v53, 5 }
  0x20   : > { %v529_v63 = vmax.bf16 %v521_v54, %v520_v47  ;;  %v487_v0 = vrot.slane %v485_v56, 4  ;;  %v490_v1 = vrot.slane %v488_v57, 5  ;;  %v494_v2 = vshrl.u32 %v410_v51, 16 }
  0x21   : > { %v524_v3 = vmax.bf16 %v474_v58, %v425_v40  ;;  %v530_v4 = vmax.bf16 %v523_v59, %v522_v55  ;;  %v482_v6 = vor.u32 %v481_v62, %v478_v61  ;;  %v497_v7 = vshll.u32 %v410_v51, 16 }
  0x22   : > { %v533_v8 = vmax.bf16 %v529_v63, %v522_v55  ;;  %v491_v9 = vor.u32 %v490_v1, %v487_v0  ;;  %v496_v10 = vrot.slane %v494_v2, 4  ;;  %v503_v11 = vshrl.u32 %v411_v60, 16 }
  0x23   : > { %v534_v12 = vmax.bf16 %v530_v4, %v524_v3  ;;  %v483_v14 = vrot.slane %v482_v6, 4  ;;  %v499_v15 = vrot.slane %v497_v7, 5  ;;  %v506_v16 = vshll.u32 %v411_v60, 16 }
  0x24   : > { %v537_v17 = vunpack.c.l.bf16 %v533_v8  ;;  %v428_v18 = vmax.bf16 %v419_v5, %v410_v51  ;;  %v492_v19 = vrot.slane %v491_v9, 4  ;;  %v505_v20 = vrot.slane %v503_v11, 4 }
  0x25   : > { %v538_v21 = vunpack.c.l.bf16 %v534_v12  ;;  %v500_v22 = vor.u32 %v499_v15, %v496_v10  ;;  %v508_v23 = vrot.slane %v506_v16, 5  ;;  %v525_v24 = vmax.bf16 %v483_v14, %v426_v44 }
  0x26   : > { %v429_v25 = vmax.bf16 %v420_v13, %v411_v60  ;;  %v526_v26 = vmax.bf16 %v492_v19, %v427_v48 }
  0x27   : > { %v714_v27 = vcombine.low %v537_v17, %v538_v21  ;;  %v501_v28 = vrot.slane %v500_v22, 4  ;;  %v509_v29 = vor.u32 %v508_v23, %v505_v20  ;;  %v531_v30 = vmax.bf16 %v525_v24, %v524_v3 }
  0x29   : > { %708 = vst [vmem:[%s401_s12] sm:$0xff] %v714_v27   ;;  %v510_v31 = vrot.slane %v509_v29, 4  ;;  %v527_v32 = vmax.bf16 %v501_v28, %v428_v18  ;;  %v535_v33 = vmax.bf16 %v531_v30, %v526_v26 }
  0x2b   : > { %v528_v34 = vmax.bf16 %v510_v31, %v429_v25  ;;  %v532_v35 = vmax.bf16 %v527_v32, %v526_v26  ;;  %v539_v37 = vunpack.c.l.bf16 %v535_v33 }
  0x2d   : > { %v536_v36 = vmax.bf16 %v532_v35, %v528_v34 }
  0x2f   : > { %v540_v38 = vunpack.c.l.bf16 %v536_v36 }
  0x31   : > { %v715_v39 = vcombine.low %v539_v37, %v540_v38 }
  0x33   : > { %716 = vst [vmem:[%s401_s12 + $0x8] sm:$0xff] %v715_v39  }
  0x34 PF: > { %s14_s17 = sadd.s32 1, %s768_s17   ;;  %s886_s15 = smov %s764_s16 }
  0x35   : > { %p11_p5 = scmp.ge.s32.totalorder %s14_s17, 4   ;;  %s887_s16 = smov %s889_s18 }
  0x37   :  { %13 = sbr.rel (!%p11_p5) target bundleno = 2 (0x2), region = 75 }

// kernel: basic_stem_forward.2
= control target key start
LH: loop header
LB: loop body
LE: loop exit
PB: predicated region body
PF: predicated region fallthrough
CT: control target
= control target key end

     0   :  { %v628_v0 = vmov 0   ;;  %vm182_vm0 = vcmask 154624   ;;  %vm207_vm1 = vcmask 1040384   ;;  %vm208_vm2 = vcmask 1041408   ;;  %s807_s1 = inlined_call_operand.vmem [shape: bf16[147,128], index: 1, kind: input, shape index: {}]   ;;  %s808_s0 = inlined_call_operand.vmem [shape: bf16[128,147], index: 0, kind: input, shape index: {}]   ;;  %s809_s2 = inlined_call_operand.vmem [shape: f32[1,128], index: 2, kind: input, shape index: {}]   ;;  %s810_s3 = inlined_call_operand.vmem [shape: f32[1,128], index: 3, kind: input, shape index: {}]   ;;  %s811_s4 = inlined_call_operand.vmem [shape: bf16[128,128], index: 4, kind: output, shape index: {}]  }
   0x1   :  { %214 = vmatprep.subr.bf16.mxu0 %v628_v0  ;;  %572 = vmatprep.subr.bf16.mxu1 %v628_v0  ;;  %v594_v1 = vld [vmem:[%s807_s1] sm:$0xff]   ;;  %v595_v2 = vld [vmem:[%s807_s1 + $0x8] sm:$0xff]   ;;  %v596_v3 = vld [vmem:[%s807_s1 + $0x10] sm:$0xff]   ;;  %v629_v11 = vmov 65535  }
   0x2   :  { %215 = vmatpush1.bf16.msra.mxu0 %v594_v1  ;;  %582 = vmatpush1.bf16.msra.mxu1 %v594_v1  ;;  %v597_v4 = vld [vmem:[%s807_s1 + $0x18] sm:$0xff]   ;;  %v606_v5 = vld [vmem:[%s808_s0 + $0x4] ss:$8 sps:$4 sm:$0xff]   ;;  %v600_v9 = vld [vmem:[%s807_s1 + $0x30] sm:$0xff]   ;;  %v209_v12 = vsel %vm207_vm1, 4294967295, %v629_v11 }
   0x3   :  { %216 = vmatprep.subr.bf16.mxu0 %v628_v0  ;;  %573 = vmatprep.subr.bf16.mxu1 %v628_v0  ;;  %v609_v6 = vld [vmem:[%s808_s0 + $0x44] ss:$8 sps:$4 sm:$0xff]   ;;  %v601_v10 = vld [vmem:[%s807_s1 + $0x38] sm:$0xff]   ;;  %v603_v14 = vld [vmem:[%s807_s1 + $0x48] ss:$0 sps:$4 sm:$0x33]  }
   0x4   :  { %483 = vmatprep.mubr.msk.bf16.mxu0 %vm182_vm0, %v606_v5  ;;  %v598_v7 = vld [vmem:[%s807_s1 + $0x20] sm:$0xff]   ;;  %487 = vmatprep.mubr.msk.bf16.mxu1 %vm182_vm0, %v609_v6  ;;  %v599_v8 = vld [vmem:[%s807_s1 + $0x28] sm:$0xff]   ;;  %v210_v15 = vsel %vm208_vm2, %v209_v12, 0  ;;  %v610_v19 = vld [vmem:[%s808_s0 + $0x14] ss:$8 sps:$4 sm:$0xff]  }
   0x5   :  { %v602_v13 = vld [vmem:[%s807_s1 + $0x40] sm:$0xff]   ;;  %v212_v16 = vand.u32 %v603_v14, %v210_v15  ;;  %v612_v20 = vld [vmem:[%s808_s0 + $0x54] ss:$8 sps:$4 sm:$0xff]   ;;  %v614_v21 = vld [vmem:[%s808_s0 + $0x10] ss:$8 sps:$4 sm:$0xff]  }
   0x6   :  { %217 = vmatpush1.bf16.msra.mxu0 %v595_v2  ;;  %583 = vmatpush1.bf16.msra.mxu1 %v595_v2  ;;  %v604_v17 = vld [vmem:[%s808_s0] ss:$8 sps:$4 sm:$0xff]   ;;  %v615_v22 = vld [vmem:[%s808_s0 + $0x50] ss:$8 sps:$4 sm:$0xff]   ;;  %v616_v23 = vld [vmem:[%s808_s0 + $0x24] ss:$8 sps:$4 sm:$0xff]  }
   0x7   :  { %218 = vmatprep.subr.bf16.mxu0 %v628_v0  ;;  %574 = vmatprep.subr.bf16.mxu1 %v628_v0  ;;  %v607_v18 = vld [vmem:[%s808_s0 + $0x40] ss:$8 sps:$4 sm:$0xff]   ;;  %v618_v24 = vld [vmem:[%s808_s0 + $0x64] ss:$8 sps:$4 sm:$0xff]   ;;  %v622_v27 = vld [vmem:[%s808_s0 + $0x34] ss:$8 sps:$4 sm:$0xff]  }
   0x8   :  { %v620_v25 = vld [vmem:[%s808_s0 + $0x20] ss:$8 sps:$4 sm:$0xff]   ;;  %v624_v28 = vld [vmem:[%s808_s0 + $0x74] ss:$8 sps:$4 sm:$0xff]   ;;  %v626_v29 = vld [vmem:[%s808_s0 + $0x30] ss:$8 sps:$4 sm:$0xff]  }
   0x9   :  { %v621_v26 = vld [vmem:[%s808_s0 + $0x60] ss:$8 sps:$4 sm:$0xff]   ;;  %v627_v30 = vld [vmem:[%s808_s0 + $0x70] ss:$8 sps:$4 sm:$0xff]  }
   0xa   :  { %219 = vmatpush1.bf16.msra.mxu0 %v596_v3  ;;  %584 = vmatpush1.bf16.msra.mxu1 %v596_v3  ;;  %v744_v31 = vld [vmem:[%s809_s2] ss:$0 sm:$0xff] }
   0xb   :  { %220 = vmatprep.subr.bf16.mxu0 %v628_v0  ;;  %575 = vmatprep.subr.bf16.mxu1 %v628_v0  ;;  %v749_v33 = vld [vmem:[%s810_s3] ss:$0 sm:$0xff] }
   0xe   :  { %221 = vmatpush1.bf16.msra.mxu0 %v597_v4  ;;  %585 = vmatpush1.bf16.msra.mxu1 %v597_v4 }
   0xf   :  { %222 = vmatprep.subr.bf16.mxu0 %v628_v0  ;;  %576 = vmatprep.subr.bf16.mxu1 %v628_v0 }
  0x12   :  { %223 = vmatpush1.bf16.msra.mxu0 %v598_v7  ;;  %586 = vmatpush1.bf16.msra.mxu1 %v598_v7 }
  0x13   :  { %224 = vmatprep.subr.bf16.mxu0 %v628_v0  ;;  %577 = vmatprep.subr.bf16.mxu1 %v628_v0 }
  0x16   :  { %225 = vmatpush1.bf16.msra.mxu0 %v599_v8  ;;  %587 = vmatpush1.bf16.msra.mxu1 %v599_v8 }
  0x17   :  { %226 = vmatprep.subr.bf16.mxu0 %v628_v0  ;;  %578 = vmatprep.subr.bf16.mxu1 %v628_v0 }
  0x1a   :  { %227 = vmatpush1.bf16.msra.mxu0 %v600_v9  ;;  %588 = vmatpush1.bf16.msra.mxu1 %v600_v9 }
  0x1b   :  { %228 = vmatprep.subr.bf16.mxu0 %v628_v0  ;;  %579 = vmatprep.subr.bf16.mxu1 %v628_v0 }
  0x1e   :  { %229 = vmatpush1.bf16.msra.mxu0 %v601_v10  ;;  %589 = vmatpush1.bf16.msra.mxu1 %v601_v10 }
  0x1f   :  { %230 = vmatprep.subr.bf16.mxu0 %v628_v0  ;;  %580 = vmatprep.subr.bf16.mxu1 %v628_v0 }
  0x22   :  { %231 = vmatpush1.bf16.msra.mxu0 %v602_v13  ;;  %590 = vmatpush1.bf16.msra.mxu1 %v602_v13 }
  0x23   :  { %232 = vmatprep.subr.bf16.mxu0 %v628_v0  ;;  %581 = vmatprep.subr.bf16.mxu1 %v628_v0 }
  0x26   :  { %233 = vmatpush1.bf16.msra.mxu0 %v212_v16  ;;  %591 = vmatpush1.bf16.msra.mxu1 %v212_v16 }
  0x29   :  { %247 = vmatmul.mubr.bf16.vlgmr.msra.gmra.mrb[0].mxu0 %v604_v17  ;;  %279 = vmatmul.mubr.bf16.vlgmr.msra.gmra.mrb[0].mxu1 %v607_v18 }
  0x2a   :  { %484 = vmatprep.mubr.msk.bf16.mxu0 %vm182_vm0, %v610_v19  ;;  %488 = vmatprep.mubr.msk.bf16.mxu1 %vm182_vm0, %v612_v20 }
  0x31   :  { %255 = vmatmul.mubr.bf16.gmra.mrb[4].mxu0 %v614_v21  ;;  %287 = vmatmul.mubr.bf16.gmra.mrb[4].mxu1 %v615_v22 }
  0x32   :  { %485 = vmatprep.mubr.msk.bf16.mxu0 %vm182_vm0, %v616_v23  ;;  %489 = vmatprep.mubr.msk.bf16.mxu1 %vm182_vm0, %v618_v24 }
  0x39   :  { %263 = vmatmul.mubr.bf16.gmra.mrb[8].mxu0 %v620_v25  ;;  %295 = vmatmul.mubr.bf16.gmra.mrb[8].mxu1 %v621_v26 }
  0x3a   :  { %486 = vmatprep.mubr.msk.bf16.mxu0 %vm182_vm0, %v622_v27  ;;  %490 = vmatprep.mubr.msk.bf16.mxu1 %vm182_vm0, %v624_v28 }
  0x41   :  { %271 = vmatmul.mubr.bf16.gmra.mrb[12].mxu0 %v626_v29  ;;  %303 = vmatmul.mubr.bf16.gmra.mrb[12].mxu1 %v627_v30 }
  0xfc   :  { %v248_v32 = vpop.f32.mrb[0].mxu0  ;;  %v280_v34 = vpop.f32.mrb[0].mxu1 }
  0xfd   :  { %v318_v35 = vmul.f32 %v744_v31, %v248_v32  ;;  %v326_v36 = vmul.f32 %v744_v31, %v280_v34  ;;  %v250_v37 = vpop.f32.mrb[1].mxu0  ;;  %v282_v38 = vpop.f32.mrb[1].mxu1 }
  0xfe   :  { %v251_v39 = vpop.f32.mrb[2].mxu0  ;;  %v283_v40 = vpop.f32.mrb[2].mxu1 }
  0xff   :  { %v341_v41 = vadd.f32 %v749_v33, %v318_v35  ;;  %v349_v42 = vadd.f32 %v749_v33, %v326_v36  ;;  %v319_v43 = vmul.f32 %v744_v31, %v251_v39  ;;  %v327_v44 = vmul.f32 %v744_v31, %v283_v40  ;;  %v253_v45 = vpop.f32.mrb[3].mxu0  ;;  %v285_v46 = vpop.f32.mrb[3].mxu1 }
 0x101   :  { %v342_v47 = vadd.f32 %v749_v33, %v319_v43  ;;  %v350_v48 = vadd.f32 %v749_v33, %v327_v44  ;;  %v357_v49 = vmax.f32 %v341_v41, 0.0  ;;  %v365_v50 = vmax.f32 %v349_v42, 0.0 }
 0x103   :  { %v358_v51 = vmax.f32 %v342_v47, 0.0  ;;  %v366_v52 = vmax.f32 %v350_v48, 0.0 }
 0x104   :  { %v256_v53 = vpop.f32.mrb[4].mxu0  ;;  %v288_v54 = vpop.f32.mrb[4].mxu1 }
 0x105   :  { %v528_v55 = vpack.c.bf16 %v358_v51, %v357_v49  ;;  %v548_v56 = vpack.c.bf16 %v366_v52, %v365_v50  ;;  %v320_v57 = vmul.f32 %v744_v31, %v256_v53  ;;  %v328_v58 = vmul.f32 %v744_v31, %v288_v54  ;;  %v258_v59 = vpop.f32.mrb[5].mxu0  ;;  %v290_v60 = vpop.f32.mrb[5].mxu1 }
 0x106   :  { %v259_v61 = vpop.f32.mrb[6].mxu0  ;;  %v291_v62 = vpop.f32.mrb[6].mxu1 }
 0x107   :  { %529 = vst [vmem:[%s811_s4] sm:$0xff] %v528_v55   ;;  %568 = vst [vmem:[%s811_s4 + $0x20] sm:$0xff] %v548_v56   ;;  %v343_v63 = vadd.f32 %v749_v33, %v320_v57  ;;  %v351_v0 = vadd.f32 %v749_v33, %v328_v58  ;;  %v321_v1 = vmul.f32 %v744_v31, %v259_v61  ;;  %v261_v3 = vpop.f32.mrb[7].mxu0  ;;  %v293_v4 = vpop.f32.mrb[7].mxu1 }
 0x108   :  { %v329_v2 = vmul.f32 %v744_v31, %v291_v62 }
 0x109   :  { %v344_v5 = vadd.f32 %v749_v33, %v321_v1  ;;  %v359_v7 = vmax.f32 %v343_v63, 0.0  ;;  %v367_v8 = vmax.f32 %v351_v0, 0.0 }
 0x10a   :  { %v352_v6 = vadd.f32 %v749_v33, %v329_v2 }
 0x10b   :  { %v360_v9 = vmax.f32 %v344_v5, 0.0 }
 0x10c   :  { %v368_v10 = vmax.f32 %v352_v6, 0.0  ;;  %v264_v11 = vpop.f32.mrb[8].mxu0  ;;  %v296_v12 = vpop.f32.mrb[8].mxu1 }
 0x10d   :  { %v533_v13 = vpack.c.bf16 %v360_v9, %v359_v7  ;;  %v322_v15 = vmul.f32 %v744_v31, %v264_v11  ;;  %v330_v16 = vmul.f32 %v744_v31, %v296_v12  ;;  %v266_v17 = vpop.f32.mrb[9].mxu0  ;;  %v298_v18 = vpop.f32.mrb[9].mxu1 }
 0x10e   :  { %v553_v14 = vpack.c.bf16 %v368_v10, %v367_v8  ;;  %v267_v19 = vpop.f32.mrb[10].mxu0  ;;  %v299_v20 = vpop.f32.mrb[10].mxu1 }
 0x10f   :  { %565 = vst [vmem:[%s811_s4 + $0x8] sm:$0xff] %v533_v13   ;;  %v345_v21 = vadd.f32 %v749_v33, %v322_v15  ;;  %v353_v22 = vadd.f32 %v749_v33, %v330_v16  ;;  %v323_v23 = vmul.f32 %v744_v31, %v267_v19  ;;  %v331_v24 = vmul.f32 %v744_v31, %v299_v20  ;;  %v269_v25 = vpop.f32.mrb[11].mxu0  ;;  %v301_v26 = vpop.f32.mrb[11].mxu1 }
 0x110   :  { %569 = vst [vmem:[%s811_s4 + $0x28] sm:$0xff] %v553_v14  }
 0x111   :  { %v346_v27 = vadd.f32 %v749_v33, %v323_v23  ;;  %v354_v28 = vadd.f32 %v749_v33, %v331_v24  ;;  %v361_v29 = vmax.f32 %v345_v21, 0.0  ;;  %v369_v30 = vmax.f32 %v353_v22, 0.0 }
 0x113   :  { %v362_v32 = vmax.f32 %v346_v27, 0.0  ;;  %v370_v34 = vmax.f32 %v354_v28, 0.0 }
 0x114   :  { %v272_v35 = vpop.f32.mrb[12].mxu0  ;;  %v304_v36 = vpop.f32.mrb[12].mxu1 }
 0x115   :  { %v538_v37 = vpack.c.bf16 %v362_v32, %v361_v29  ;;  %v558_v38 = vpack.c.bf16 %v370_v34, %v369_v30  ;;  %v324_v39 = vmul.f32 %v744_v31, %v272_v35  ;;  %v332_v40 = vmul.f32 %v744_v31, %v304_v36  ;;  %v274_v41 = vpop.f32.mrb[13].mxu0  ;;  %v306_v42 = vpop.f32.mrb[13].mxu1 }
 0x116   :  { %v275_v43 = vpop.f32.mrb[14].mxu0  ;;  %v307_v44 = vpop.f32.mrb[14].mxu1 }
 0x117   :  { %566 = vst [vmem:[%s811_s4 + $0x10] sm:$0xff] %v538_v37   ;;  %570 = vst [vmem:[%s811_s4 + $0x30] sm:$0xff] %v558_v38   ;;  %v347_v45 = vadd.f32 %v749_v33, %v324_v39  ;;  %v355_v46 = vadd.f32 %v749_v33, %v332_v40  ;;  %v325_v47 = vmul.f32 %v744_v31, %v275_v43  ;;  %v277_v49 = vpop.f32.mrb[15].mxu0  ;;  %v309_v50 = vpop.f32.mrb[15].mxu1 }
 0x118   :  { %v333_v48 = vmul.f32 %v744_v31, %v307_v44 }
 0x119   :  { %v348_v51 = vadd.f32 %v749_v33, %v325_v47  ;;  %v363_v53 = vmax.f32 %v347_v45, 0.0  ;;  %v371_v54 = vmax.f32 %v355_v46, 0.0 }
 0x11a   :  { %v356_v52 = vadd.f32 %v749_v33, %v333_v48 }
 0x11b   :  { %v364_v55 = vmax.f32 %v348_v51, 0.0 }
 0x11c   :  { %v372_v56 = vmax.f32 %v356_v52, 0.0 }
 0x11d   :  { %v543_v57 = vpack.c.bf16 %v364_v55, %v363_v53 }
 0x11e   :  { %v563_v58 = vpack.c.bf16 %v372_v56, %v371_v54 }
 0x11f   :  { %567 = vst [vmem:[%s811_s4 + $0x18] sm:$0xff] %v543_v57  }
 0x120   :  { %571 = vst [vmem:[%s811_s4 + $0x38] sm:$0xff] %v563_v58  }

</bundles_post_ra>
